<compile_context>
chip_gen: v6e
topology: v6e:2x2x1
jax: 0.10.0
libtpu: 0.0.40
codegen_flags: <defaults>
</compile_context>

<pallas_src>
import jax
import jax.numpy as jnp
import numpy as np
from jax.experimental import pallas as pl
from jax.experimental.pallas import tpu as pltpu

LN_EPS = 1e-5  # nn.LayerNorm default


def _round_up(x, m):
    return (x + m - 1) // m * m


def _pick_tile(M, tile_m):
    """Pick an M-tile that divides M exactly when a reasonable one exists.

    Avoids the wrapper pad + slice HBM passes. Targets >= 2 grid steps so both
    v7x TensorCores get work under dimension_semantics=("parallel",).
    Returns (tm, Mp) where Mp is the (possibly padded) row count.
    """
    if M % 8 == 0:
        target = min(tile_m, max(8, _round_up(-(-M // 2), 8)))
        target = (target // 8) * 8
        floor = min(128, target)          # v5e: keep tiles >= 128 rows when M allows
        tm = target
        while tm >= floor:
            if M % tm == 0:
                return tm, M
            tm -= 8
    # fallback: pad M up to a tile multiple (extra pad/slice HBM pass).
    # TODO(synk): pad Na upstream once (multiple of 64) to avoid this path.
    tm = min(tile_m, _round_up(M, 8))
    return tm, _round_up(M, tm)


# ----------------------------------------------------------------------------
# Kernel: one (tile_m, H) row-tile of  Linear -> LayerNorm -> Linear
# (gamma/beta already folded into the second projection's weights/bias)
# ----------------------------------------------------------------------------
def _proj_head_kernel(x_ref, w1_ref, b1_ref, w2_ref, b2_ref, o_ref):
    # projection1 (+bias): bf16 x bf16 operands, f32 accumulation on the MXU
    h = jnp.dot(x_ref[...], w1_ref[...],
                preferred_element_type=jnp.float32) + b1_ref[...]      # (tm, Dm) f32

    # LayerNorm (affine folded into w2/b2): centered variance for precision
    inv_dm = 1.0 / h.shape[-1]
    mean = jnp.sum(h, axis=-1, keepdims=True) * inv_dm
    hc = h - mean
    var = jnp.sum(hc * hc, axis=-1, keepdims=True) * inv_dm
    hn = hc * jax.lax.rsqrt(var + LN_EPS)

    # projection2 (+ folded bias): bf16 MXU operands, f32 accumulation
    o = jnp.dot(hn.astype(jnp.bfloat16), w2_ref[...],
                preferred_element_type=jnp.float32) + b2_ref[...]      # (tm, De) f32
    o_ref[...] = o.astype(o_ref.dtype)                                 # bf16 store


# ----------------------------------------------------------------------------
# One-time parameter prep: fold LayerNorm affine into projection2, cast to bf16
# ----------------------------------------------------------------------------
def prepare_params(params):
    w1, b1, g, beta, w2, b2 = params
    w2_fold = g.reshape(-1, 1) * w2            # (Dm, De), f32 fold first
    b2_fold = beta @ w2 + b2                   # (1, De), stays f32
    return (w1.astype(jnp.bfloat16), b1, w2_fold.astype(jnp.bfloat16), b2_fold)


# ----------------------------------------------------------------------------
# Wrapper: AudioEmbedder projection head, (B, Na, H) -> (B, Na, EMB)
# ----------------------------------------------------------------------------
def audio_projection_head(hidden, prepared_params, *, tile_m=512):
    """Flattens (B, Na) into one M axis, tiles M, keeps weights VMEM-resident.

    Activations stream in bf16 (tile_m, H) tiles; the bf16 (H, 512)/(512, EMB)
    weights stay pinned via constant index_maps (fetched once, never re-DMA'd).
    Output is written lane-dense in bf16.
    """
    w1b, b1, w2b, b2f = prepared_params
    B, N, H = hidden.shape
    Dm = w1b.shape[1]
    De = w2b.shape[1]

    if hidden.dtype != jnp.bfloat16:
        # TODO(synk): upstream HuBERT should emit bf16 hidden states directly;
        # this cast costs an extra HBM pass when it triggers.
        hidden = hidden.astype(jnp.bfloat16)

    M = B * N
    tm, Mp = _pick_tile(M, tile_m)

    x2d = hidden.reshape(M, H)
    if Mp != M:
        x2d = jnp.pad(x2d, ((0, Mp - M), (0, 0)))   # padded rows sliced off below

    flops = 2 * Mp * H * Dm + 2 * Mp * Dm * De
    bytes_accessed = (Mp * H + Mp * De) * 2 + (H * Dm + Dm * De) * 2 \
        + (Dm + De) * 4

    out = pl.pallas_call(
        _proj_head_kernel,
        out_shape=jax.ShapeDtypeStruct((Mp, De), jnp.bfloat16),
        grid=(Mp // tm,),
        in_specs=[
            pl.BlockSpec((tm, H), lambda i: (i, 0)),      # bf16 activation M-tile
            pl.BlockSpec((H, Dm), lambda i: (0, 0)),      # resident bf16 w1
            pl.BlockSpec((1, Dm), lambda i: (0, 0)),      # f32 b1
            pl.BlockSpec((Dm, De), lambda i: (0, 0)),     # resident bf16 w2 (g folded)
            pl.BlockSpec((1, De), lambda i: (0, 0)),      # f32 b2 (beta folded)
        ],
        out_specs=pl.BlockSpec((tm, De), lambda i: (i, 0)),
        compiler_params=pltpu.CompilerParams(
            dimension_semantics=("parallel",)),           # M-tiles -> both v7x TCs
        cost_estimate=pl.CostEstimate(
            flops=flops, transcendentals=Mp, bytes_accessed=bytes_accessed),
    )(x2d, w1b, b1, w2b, b2f)

    if Mp != M:
        out = out[:M]
    return out.reshape(B, N, De)


# ----------------------------------------------------------------------------
# Deterministic parameter init (mimics projection1 / LayerNorm / projection2)
# ----------------------------------------------------------------------------
def init_proj_params(key, hidden, mid, emb):
    k1, k2, k3, k4 = jax.random.split(key, 4)
    w1 = jax.random.normal(k1, (hidden, mid), jnp.float32) / jnp.sqrt(hidden)
    b1 = jax.random.normal(k2, (1, mid), jnp.float32) * 0.01
    g = jnp.ones((1, mid), jnp.float32)
    beta = jnp.zeros((1, mid), jnp.float32)
    w2 = jax.random.normal(k3, (mid, emb), jnp.float32) / jnp.sqrt(mid)
    b2 = jax.random.normal(k4, (1, emb), jnp.float32) * 0.01
    return (w1, b1, g, beta, w2, b2)


# ----------------------------------------------------------------------------
# Pure-JAX f32 reference (PyTorch-equivalent math) for correctness check
# ----------------------------------------------------------------------------
def _proj_ref(x, params):
    w1, b1, g, beta, w2, b2 = params
    h = x @ w1 + b1
    mean = h.mean(-1, keepdims=True)
    var = ((h - mean) ** 2).mean(-1, keepdims=True)
    hn = (h - mean) / jnp.sqrt(var + LN_EPS) * g + beta
    return hn @ w2 + b2


if __name__ == "__main__":
    key = jax.random.PRNGKey(0)
    kh, kp = jax.random.split(key)

    # Small, module-consistent shapes
    B, Na = 2, 8          # batch, audio tokens (Na = T/320 for HuBERT)
    H = 256               # simulated HuBERT hidden size (real: 768)
    MID, EMB = 512, 512   # projection1 -> LayerNorm(512) -> projection2 dims

    # TODO(synk): real inputs are raw 16 kHz waveforms; the HuBERT backbone's
    #             hidden states are simulated directly here (emitted as bf16,
    #             matching the kernel's bf16 activation-streaming contract).
    hubert_hidden = jax.random.normal(kh, (B, Na, H), jnp.float32).astype(jnp.bfloat16)
    params = init_proj_params(kp, H, MID, EMB)
    prepared = prepare_params(params)          # one-time fold + bf16 cast

    audio_feats = audio_projection_head(hubert_hidden, prepared)
    jax.block_until_ready(audio_feats)
    assert audio_feats.shape == (B, Na, EMB)
    assert audio_feats.dtype == jnp.bfloat16

    # Check against the f32 reference (sharing the bf16-rounded inputs). The
    # kernel uses bf16 MXU operands / bf16 output with f32 accumulation, so the
    # tolerance is relaxed accordingly.
    ref = _proj_ref(hubert_hidden.astype(jnp.float32), params)
    np.testing.assert_allclose(np.asarray(audio_feats, dtype=np.float32),
                               np.asarray(ref), rtol=3e-2, atol=3e-2)

    print("KERNEL_OK")
</pallas_src>

<mosaic_0001>
module attributes {stable_mosaic.version = 11 : i64} {
  func.func @_proj_head_kernel(%arg0: i32, %arg1: memref<8x256xbf16, #tpu.memory_space<vmem>>, %arg2: memref<256x512xbf16, #tpu.memory_space<vmem>>, %arg3: memref<1x512xf32, #tpu.memory_space<vmem>>, %arg4: memref<512x512xbf16, #tpu.memory_space<vmem>>, %arg5: memref<1x512xf32, #tpu.memory_space<vmem>>, %arg6: memref<8x512xbf16, #tpu.memory_space<vmem>>) attributes {dimension_semantics = [#tpu.dimension_semantics<parallel>], iteration_bounds = array<i64: 2>, scalar_prefetch = 0 : i64, scratch_operands = 0 : i64, tpu.core_type = #tpu.core_type<tc>, window_params = [{transform_indices = @transform_0, window_bounds = array<i64: 8, 256>}, {pipeline_mode = #tpu.pipeline_mode<synchronous>, transform_indices = @transform_1, window_bounds = array<i64: 256, 512>}, {pipeline_mode = #tpu.pipeline_mode<synchronous>, transform_indices = @transform_2, window_bounds = array<i64: 1, 512>}, {pipeline_mode = #tpu.pipeline_mode<synchronous>, transform_indices = @transform_3, window_bounds = array<i64: 512, 512>}, {pipeline_mode = #tpu.pipeline_mode<synchronous>, transform_indices = @transform_4, window_bounds = array<i64: 1, 512>}, {transform_indices = @transform_5, window_bounds = array<i64: 8, 512>}]} {
    %c0 = arith.constant 0 : index
    %c0_0 = arith.constant 0 : index
    %0 = vector.load %arg1[%c0, %c0_0] : memref<8x256xbf16, #tpu.memory_space<vmem>>, vector<8x256xbf16>
    %c0_1 = arith.constant 0 : index
    %c0_2 = arith.constant 0 : index
    %1 = vector.load %arg2[%c0_1, %c0_2] : memref<256x512xbf16, #tpu.memory_space<vmem>>, vector<256x512xbf16>
    %cst = arith.constant dense<0.000000e+00> : vector<8x512xf32>
    %2 = tpu.matmul %0, %1, %cst {dimension_numbers = #tpu.dot_dimension_numbers<[1], [0], [0], [1], [0, 0, 1, 1], [], []>} : vector<8x256xbf16>, vector<256x512xbf16>, vector<8x512xf32> -> vector<8x512xf32>
    %c0_3 = arith.constant 0 : index
    %c0_4 = arith.constant 0 : index
    %3 = vector.load %arg3[%c0_3, %c0_4] : memref<1x512xf32, #tpu.memory_space<vmem>>, vector<1x512xf32>
    %4 = vector.broadcast %3 : vector<1x512xf32> to vector<8x512xf32>
    %5 = arith.addf %2, %4 : vector<8x512xf32>
    %cst_5 = arith.constant dense<0.000000e+00> : vector<8xf32>
    %6 = vector.multi_reduction <add>, %5, %cst_5 [1] : vector<8x512xf32> to vector<8xf32>
    %7 = vector.shape_cast %6 : vector<8xf32> to vector<8x1xf32>
    %cst_6 = arith.constant 0.001953125 : f32
    %8 = vector.broadcast %cst_6 : f32 to vector<8x1xf32>
    %9 = arith.mulf %7, %8 : vector<8x1xf32>
    %10 = vector.broadcast %9 : vector<8x1xf32> to vector<8x512xf32>
    %11 = arith.subf %5, %10 : vector<8x512xf32>
    %12 = arith.mulf %11, %11 : vector<8x512xf32>
    %cst_7 = arith.constant dense<0.000000e+00> : vector<8xf32>
    %13 = vector.multi_reduction <add>, %12, %cst_7 [1] : vector<8x512xf32> to vector<8xf32>
    %14 = vector.shape_cast %13 : vector<8xf32> to vector<8x1xf32>
    %cst_8 = arith.constant 0.001953125 : f32
    %15 = vector.broadcast %cst_8 : f32 to vector<8x1xf32>
    %16 = arith.mulf %14, %15 : vector<8x1xf32>
    %cst_9 = arith.constant 9.99999974E-6 : f32
    %17 = vector.broadcast %cst_9 : f32 to vector<8x1xf32>
    %18 = arith.addf %16, %17 : vector<8x1xf32>
    %19 = math.rsqrt %18 : vector<8x1xf32>
    %20 = vector.broadcast %19 : vector<8x1xf32> to vector<8x512xf32>
    %21 = arith.mulf %11, %20 : vector<8x512xf32>
    %22 = arith.truncf %21 : vector<8x512xf32> to vector<8x512xbf16>
    %c0_10 = arith.constant 0 : index
    %c0_11 = arith.constant 0 : index
    %23 = vector.load %arg4[%c0_10, %c0_11] : memref<512x512xbf16, #tpu.memory_space<vmem>>, vector<512x512xbf16>
    %cst_12 = arith.constant dense<0.000000e+00> : vector<8x512xf32>
    %24 = tpu.matmul %22, %23, %cst_12 {dimension_numbers = #tpu.dot_dimension_numbers<[1], [0], [0], [1], [0, 0, 1, 1], [], []>} : vector<8x512xbf16>, vector<512x512xbf16>, vector<8x512xf32> -> vector<8x512xf32>
    %c0_13 = arith.constant 0 : index
    %c0_14 = arith.constant 0 : index
    %25 = vector.load %arg5[%c0_13, %c0_14] : memref<1x512xf32, #tpu.memory_space<vmem>>, vector<1x512xf32>
    %26 = vector.broadcast %25 : vector<1x512xf32> to vector<8x512xf32>
    %27 = arith.addf %24, %26 : vector<8x512xf32>
    %28 = arith.truncf %27 : vector<8x512xf32> to vector<8x512xbf16>
    %c0_15 = arith.constant 0 : index
    %c0_16 = arith.constant 0 : index
    %29 = vector.load %arg6[%c0_15, %c0_16] : memref<8x512xbf16, #tpu.memory_space<vmem>>, vector<8x512xbf16>
    tpu.vector_store %arg6[%c0_15, %c0_16], %28 {strides = array<i32>} : memref<8x512xbf16, #tpu.memory_space<vmem>>, vector<8x512xbf16>,
    return
  }
  func.func @transform_0(%arg0: i32) -> (i32, i32) {
    %c0_i32 = arith.constant 0 : i32
    %c0_i32_0 = arith.constant 0 : i32
    return %arg0, %c0_i32 : i32, i32
  }
  func.func @transform_1(%arg0: i32) -> (i32, i32) {
    %c0_i32 = arith.constant 0 : i32
    %c0_i32_0 = arith.constant 0 : i32
    %c0_i32_1 = arith.constant 0 : i32
    return %c0_i32, %c0_i32_0 : i32, i32
  }
  func.func @transform_2(%arg0: i32) -> (i32, i32) {
    %c0_i32 = arith.constant 0 : i32
    %c0_i32_0 = arith.constant 0 : i32
    %c0_i32_1 = arith.constant 0 : i32
    return %c0_i32, %c0_i32_0 : i32, i32
  }
  func.func @transform_3(%arg0: i32) -> (i32, i32) {
    %c0_i32 = arith.constant 0 : i32
    %c0_i32_0 = arith.constant 0 : i32
    %c0_i32_1 = arith.constant 0 : i32
    return %c0_i32, %c0_i32_0 : i32, i32
  }
  func.func @transform_4(%arg0: i32) -> (i32, i32) {
    %c0_i32 = arith.constant 0 : i32
    %c0_i32_0 = arith.constant 0 : i32
    %c0_i32_1 = arith.constant 0 : i32
    return %c0_i32, %c0_i32_0 : i32, i32
  }
  func.func @transform_5(%arg0: i32) -> (i32, i32) {
    %c0_i32 = arith.constant 0 : i32
    %c0_i32_0 = arith.constant 0 : i32
    return %arg0, %c0_i32 : i32, i32
  }
}

</mosaic_0001>

<bundles_post_ra>
// kernel: tpu_custom_call.1
= control target key start
LH: loop header
LB: loop body
LE: loop exit
PB: predicated region body
PF: predicated region fallthrough
CT: control target
= control target key end

     0   :  { %10 = vsyncpa [#allocation3], 0  ;;  %s2938_s0 = inlined_call_operand.hbm [shape: bf16[16,256], index: 0, kind: input, shape index: {}]   ;;  %s2939_s1 = inlined_call_operand.hbm [shape: bf16[256,512], index: 1, kind: input, shape index: {}]   ;;  %s2940_s2 = inlined_call_operand.hbm [shape: f32[1,512], index: 2, kind: input, shape index: {}]   ;;  %s2941_s3 = inlined_call_operand.hbm [shape: bf16[512,512], index: 3, kind: input, shape index: {}]   ;;  %s2942_s4 = inlined_call_operand.vmem [shape: f32[1,512], index: 4, kind: input, shape index: {}]   ;;  %s2943_s5 = inlined_call_operand.hbm [shape: bf16[16,512], index: 5, kind: output, shape index: {}]  }
   0x1   :  { %12 = vsyncpa [#allocation3 + $0x1], 0 }
   0x2   :  { %13 = vsyncpa [#allocation6], 0 }
   0x3   :  { %14 = vsyncpa [#allocation9], 0 }
   0x4   :  { %15 = vsyncpa [#allocation4], 0 }
   0x5   :  { %17 = vsyncpa [#allocation4 + $0x1], 0  ;;  %s2703_s18 = smov 0   ;;  %s2705_s19 = smov 0  }
   0x6   :  { %s2707_s20 = smov 0   ;;  %s2709_s21 = smov 0  }
   0x7 LB: > { %s2724_s22 = sadd.s32 4294967295, %s2664_s21   ;;  %s1895_s23 = sadd.s32 4294967294, %s2664_s21   ;;  %s2664_s21 = sphi %s2709_s21, %s2967_s21   ;;  %s2660_s20 = sphi %s2707_s20, %s2966_s20   ;;  %s2656_s19 = sphi %s2705_s19, %s2965_s19   ;;  %s2652_s18 = sphi %s2703_s18, %s2964_s18  }
   0x8   : > { %p43_p0 = scmp.ne.s32.totalorder %s2656_s19, %s2652_s18  ;;  %p2944_p1 = scmp.eq.s32.totalorder %s2724_s22, 0 }
   0x9   : > { %p157_p3 = scmp.eq.s32.totalorder %s1895_s23, 1  ;;  %p1896_p5 = scmp.ge.s32.totalorder %s2664_s21, 1 }
   0xa   : > { %p2733_p4 = por %p2944_p1, %p43_p0  ;;  %p164_p7 = scmp.lt.s32.totalorder %s2664_s21, 3 }
   0xb   : > { %p2738_p6 = por %p157_p3, %p43_p0  ;;  %s2666_s27 = smov [#allocation5]  }
   0xc   : > { %s2948_s24 = scalar_select %p2733_p4, 1, 0 }
   0xd   : > { %s2949_s25 = scalar_select %p2738_p6, 1, 0 }
   0xe   : > { %p2743_p8 = pnand %p1896_p5, %p164_p7  ;;  %s176_s28 = sshll.u32 %s2666_s27, 4  ;;  %s177_s28 = int_to_ptr.vmem [resolvable:$true] %s176_s28 }
   0xf   : > { %s2667_s30 = smov [#allocation7]   ;;  %s2668_s7 = smov [#allocation8]  }
  0x10   : > { %s2950_s26 = scalar_select %p2743_p8, 1, 0 }
  0x11   : > { %p2131_p9 = pneg %p2743_p8  ;;  %s190_s6 = sshll.u32 %s2667_s30, 4  ;;  %s191_s6 = int_to_ptr.vmem [resolvable:$true] %s190_s6 }
  0x12   : > { %s200_s8 = sshll.u32 %s2668_s7, 4  ;;  %s2497_s9 = scalar_lea.vmem %s177_s28, 8192  ;;  %s201_s8 = int_to_ptr.vmem [resolvable:$true] %s200_s8 }
  0x13   : > { %p2752_p11 = pnand %p2131_p9, %p2944_p1  ;;  %p2498_p13 = scmp.ne.s32.totalorder %s177_s28, %s2497_s9 }
  0x14   : > { %p2505_p5 = scmp.lt.s32.totalorder %s177_s28, %s177_s28  ;;  %p2506_p7 = scmp.lt.s32.totalorder %s2497_s9, %s2497_s9 }
  0x15   : > { %p2488_p12 = pneg %p2752_p11 }
  0x16   : > { %p2507_p9 = por %p2506_p7, %p2505_p5 }
  0x17   : > { %p2500_p0 = pnand %p2498_p13, %p2488_p12 }
  0x19   : > { %p2501_p3 = pneg %p2500_p0 }
  0x1b   : > { %p2508_p10 = pnand %p2507_p9, %p2501_p3 }
  0x1d   : > { %2511 = shalt.err (!%p2508_p10)
}
  0x1e   : > { %s2669_s10 = smov 256   ;;  %s2670_s11 = smov 16  }
  0x1f   : > { %2134 = dma.hbm_to_vmem [thread:$0]  (!%p2752_p11), %s2939_s1, 8192, %s177_s28, [#allocation6], %s2669_s10, %s2669_s10, %s2670_s11  }
  0x20   : > { %s2523_s14 = scalar_lea.vmem %s191_s6, 64  ;;  %p2531_p2 = scmp.lt.s32.totalorder %s191_s6, %s191_s6 }
  0x21   : > { %p2524_p1 = scmp.ne.s32.totalorder %s191_s6, %s2523_s14  ;;  %p2532_p6 = scmp.lt.s32.totalorder %s2523_s14, %s2523_s14 }
  0x23   : > { %p2526_p13 = pnand %p2524_p1, %p2488_p12  ;;  %p2533_p5 = por %p2532_p6, %p2531_p2 }
  0x25   : > { %p2527_p0 = pneg %p2526_p13 }
  0x27   : > { %p2534_p3 = pnand %p2533_p5, %p2527_p0 }
  0x29   : > { %2537 = shalt.err (!%p2534_p3)
}
  0x2a   : > { %2137 = dma.hbm_to_vmem [thread:$0]  (!%p2752_p11), %s2940_s2, 64, %s191_s6, [#allocation6]  }
  0x2b   : > { %s2549_s17 = scalar_lea.vmem %s201_s8, 16384  ;;  %p2557_p9 = scmp.lt.s32.totalorder %s201_s8, %s201_s8 }
  0x2c   : > { %p2550_p10 = scmp.ne.s32.totalorder %s201_s8, %s2549_s17  ;;  %p2558_p13 = scmp.lt.s32.totalorder %s2549_s17, %s2549_s17 }
  0x2e   : > { %p2552_p7 = pnand %p2550_p10, %p2488_p12  ;;  %p2559_p4 = por %p2558_p13, %p2557_p9 }
  0x30   : > { %p2553_p1 = pneg %p2552_p7 }
  0x32   : > { %p2560_p2 = pnand %p2559_p4, %p2553_p1 }
  0x34   : > { %2563 = shalt.err (!%p2560_p2)
}
  0x35   : > { %2140 = dma.hbm_to_vmem [thread:$0]  (!%p2752_p11), %s2941_s3, 16384, %s201_s8, [#allocation9], %s2669_s10, %s2669_s10, %s2670_s11  }
  0x36   : > { %s2783_s28 = sadd.s32 1, %s2664_s21   ;;  %s30_s29 = sadd.s32 1, %s2660_s20 }
  0x37   : > { %s27_s30 = ssub.s32 %s2664_s21, %s2783_s28  ;;  %p37_p6 = scmp.ne.s32.totalorder %s2660_s20, %s2656_s19 }
  0x38   : > { %p28_p4 = scmp.eq.s32.totalorder %s27_s30, 0  ;;  %p38_p12 = scmp.eq.s32.totalorder %s2664_s21, 0 }
  0x39   : > { %p2152_p0 = scmp.lt.s32.totalorder %s2664_s21, 2  ;;  %p2952_p3 = scmp.eq.s32.totalorder %s2724_s22, 1 }
  0x3a   : > { %s2793_s6 = scalar_select %p28_p4, %s2660_s20, %s30_s29  }
  0x3b   : > { %p39_p5 = por %p38_p12, %p37_p6  ;;  %p2797_p10 = por %p2952_p3, %p37_p6 }
  0x3c   : > { %s217_s9 = sand.u32 1, %s2660_s20   ;;  %s2111_s12 = sshll.u32 %s2664_s21, 7 }
  0x3d   : > { %s2953_s7 = scalar_select %p2797_p10, 1, 0 }
  0x3e   : > { %s1901_s8 = sshll.u32 %s217_s9, 3  ;;  %s2806_s13 = scalar_lea.hbm %s2938_s0, %s2111_s12 }
  0x3f   : > { %s221_s14 = scalar_lea.vmem [#allocation2], %s1901_s8  ;;  %p2808_p11 = pnand %p2152_p0, %p39_p5 }
  0x40   : > { %s229_s15 = sshll.u32 %s221_s14, 4  ;;  %s218_s17 = scalar_lea.sflag [#allocation3], %s217_s9  ;;  %s230_s15 = int_to_ptr.vmem [resolvable:$true] %s229_s15 }
  0x41   : > { %s2564_s23 = scalar_lea.hbm %s2806_s13, 128  ;;  %p2566_p1 = pneg %p2808_p11 }
  0x42   : > { %p2565_p7 = scmp.ne.s32.totalorder %s2806_s13, %s2564_s23  ;;  %s2569_s29 = scalar_lea.hbm %s2938_s0, 256 }
  0x43   : > { %p2570_p2 = scmp.lt.s32.totalorder %s2806_s13, %s2938_s0  ;;  %p2571_p4 = scmp.lt.s32.totalorder %s2569_s29, %s2564_s23 }
  0x44   : > { %p2567_p9 = pnand %p2566_p1, %p2565_p7 }
  0x45   : > { %p2572_p6 = por %p2571_p4, %p2570_p2 }
  0x46   : > { %p2568_p13 = pneg %p2567_p9 }
  0x48   : > { %p2573_p12 = pnand %p2572_p6, %p2568_p13 }
  0x4a   : > { %2576 = shalt.err (!%p2573_p12)
}
  0x4b   : > { %s2577_s10 = scalar_lea.vmem %s230_s15, 128  ;;  %s2671_s9 = smov [#allocation2]  }
  0x4c   : > { %p2578_p0 = scmp.ne.s32.totalorder %s230_s15, %s2577_s10  ;;  %s2582_s11 = sshll.u32 %s2671_s9, 4  ;;  %s2583_s11 = int_to_ptr.vmem [resolvable:$false] %s2582_s11 }
  0x4d   : > { %s2584_s14 = scalar_lea.vmem %s2583_s11, 256  ;;  %p2585_p7 = scmp.lt.s32.totalorder %s230_s15, %s2583_s11 }
  0x4e   : > { %p2580_p5 = pnand %p2578_p0, %p2566_p1  ;;  %p2586_p9 = scmp.lt.s32.totalorder %s2584_s14, %s2577_s10 }
  0x50   : > { %p2581_p3 = pneg %p2580_p5  ;;  %p2587_p10 = por %p2586_p9, %p2585_p7 }
  0x52   : > { %p2588_p8 = pnand %p2587_p10, %p2581_p3 }
  0x54   : > { %2591 = shalt.err (!%p2588_p8)
}
  0x55   : > { %2144 = dma.hbm_to_vmem [thread:$0]  (!%p2808_p11), %s2806_s13, 128, %s230_s15, %s218_s17  }
  0x56   : > { %p2955_p13 = scmp.ne.s32.totalorder %s2950_s26, 0 }
  0x57   : > { %s2829_s23 = sand.u32 (!%p2955_p13), 1, %s2656_s19   ;;  %p2956_p1 = scmp.ne.s32.totalorder (!%p2955_p13), %s2948_s24, 0 }
  0x58   : > { %238 = sbr.rel (%p2955_p13) target bundleno = 957 (0x3bd), region = 40  ;;  %s1905_s27 = sshll.u32 (!%p2955_p13), %s2829_s23, 3 }
  0x59   : > { %s241_s30 = scalar_lea.sflag (!%p2955_p13), [#allocation3], %s2829_s23  ;;  %s2833_s29 = scalar_lea.vmem (!%p2955_p13), [#allocation2], %s1905_s27 }
  0x5d   : > { %2635 = dma.done.wait (%p2956_p1), %s241_s30, 128  }
  0x5e   : > { %2637 = vsyncadd (%p2956_p1), %s241_s30, 4294967168  ;;  %p2957_p8 = scmp.eq.s32.totalorder %s2724_s22, 0 }
  0x60   : > { %2639 = dma.done.wait (%p2957_p8), [#allocation6], 8256   ;;  %p2958_p10 = pmov %p2957_p8 }
  0x61   : > { %p2959_p11 = pmov %p2957_p8 }
  0x62   : > { %2641 = vsyncadd (%p2958_p10), [#allocation6], 4294959040 }
  0x63   : > { %2643 = dma.done.wait (%p2959_p11), [#allocation9], 16384   ;;  %p2960_p2 = pmov %p2957_p8 }
  0x64   : > { %v2194_v0 = vld [vmem:[#allocation5 + $0xe4] ss:$16 sps:$4 sm:$0xff]   ;;  %v2196_v1 = vld [vmem:[#allocation5 + $0xec] ss:$16 sps:$4 sm:$0xff]   ;;  %v2198_v2 = vld [vmem:[#allocation5 + $0xe0] ss:$16 sps:$4 sm:$0xff]  }
  0x65   : > { %2645 = vsyncadd (%p2960_p2), [#allocation9], 4294950912  ;;  %697 = vmatprep.subr.bf16.mxu0 %v2194_v0  ;;  %v2199_v3 = vld [vmem:[#allocation5 + $0xe8] ss:$16 sps:$4 sm:$0xff]   ;;  %738 = vmatprep.subr.bf16.mxu1 %v2196_v1  ;;  %v2200_v4 = vld [vmem:[#allocation5 + $0xc4] ss:$16 sps:$4 sm:$0xff]  }
  0x66   : > { %698 = vmatpush1.bf16.msra.mxu0 %v2198_v2  ;;  %739 = vmatpush1.bf16.msra.mxu1 %v2199_v3  ;;  %v2202_v5 = vld [vmem:[#allocation5 + $0xcc] ss:$16 sps:$4 sm:$0xff]   ;;  %v2204_v6 = vld [vmem:[#allocation5 + $0xc0] ss:$16 sps:$4 sm:$0xff]   ;;  %v2205_v7 = vld [vmem:[#allocation5 + $0xc8] ss:$16 sps:$4 sm:$0xff]   ;;  %v350_v3 = vlaneseq }
  0x67   : > { %699 = vmatprep.subr.bf16.mxu0 %v2200_v4  ;;  %740 = vmatprep.subr.bf16.mxu1 %v2202_v5  ;;  %v2206_v8 = vld [vmem:[#allocation5 + $0xa4] ss:$16 sps:$4 sm:$0xff]   ;;  %v2208_v9 = vld [vmem:[#allocation5 + $0xac] ss:$16 sps:$4 sm:$0xff]   ;;  %v2210_v10 = vld [vmem:[#allocation5 + $0xa0] ss:$16 sps:$4 sm:$0xff]  }
  0x68   : > { %v2211_v11 = vld [vmem:[#allocation5 + $0xa8] ss:$16 sps:$4 sm:$0xff]   ;;  %v2212_v12 = vld [vmem:[#allocation5 + $0x84] ss:$16 sps:$4 sm:$0xff]   ;;  %v2214_v13 = vld [vmem:[#allocation5 + $0x8c] ss:$16 sps:$4 sm:$0xff]  }
  0x69   : > { %v2216_v14 = vld [vmem:[#allocation5 + $0x80] ss:$16 sps:$4 sm:$0xff]   ;;  %v2217_v15 = vld [vmem:[#allocation5 + $0x88] ss:$16 sps:$4 sm:$0xff]   ;;  %v2218_v16 = vld [vmem:[#allocation5 + $0x64] ss:$16 sps:$4 sm:$0xff]  }
  0x6a   : > { %700 = vmatpush1.bf16.msra.mxu0 %v2204_v6  ;;  %741 = vmatpush1.bf16.msra.mxu1 %v2205_v7  ;;  %v2220_v17 = vld [vmem:[#allocation5 + $0x6c] ss:$16 sps:$4 sm:$0xff]   ;;  %v2222_v18 = vld [vmem:[#allocation5 + $0x60] ss:$16 sps:$4 sm:$0xff]   ;;  %v2223_v19 = vld [vmem:[#allocation5 + $0x68] ss:$16 sps:$4 sm:$0xff]  }
  0x6b   : > { %701 = vmatprep.subr.bf16.mxu0 %v2206_v8  ;;  %742 = vmatprep.subr.bf16.mxu1 %v2208_v9  ;;  %v2224_v20 = vld [vmem:[#allocation5 + $0x44] ss:$16 sps:$4 sm:$0xff]   ;;  %v2226_v21 = vld [vmem:[#allocation5 + $0x4c] ss:$16 sps:$4 sm:$0xff]   ;;  %v2228_v22 = vld [vmem:[#allocation5 + $0x40] ss:$16 sps:$4 sm:$0xff]  }
  0x6c   : > { %v2229_v23 = vld [vmem:[#allocation5 + $0x48] ss:$16 sps:$4 sm:$0xff]   ;;  %v2230_v24 = vld [vmem:[#allocation5 + $0x24] ss:$16 sps:$4 sm:$0xff]   ;;  %v2232_v25 = vld [vmem:[#allocation5 + $0x2c] ss:$16 sps:$4 sm:$0xff]  }
  0x6d   : > { %v2234_v26 = vld [vmem:[#allocation5 + $0x20] ss:$16 sps:$4 sm:$0xff]   ;;  %v2235_v27 = vld [vmem:[#allocation5 + $0x28] ss:$16 sps:$4 sm:$0xff]   ;;  %v2236_v28 = vld [vmem:[#allocation5 + $0x4] ss:$16 sps:$4 sm:$0xff]  }
  0x6e   : > { %702 = vmatpush1.bf16.msra.mxu0 %v2210_v10  ;;  %743 = vmatpush1.bf16.msra.mxu1 %v2211_v11  ;;  %v2238_v29 = vld [vmem:[#allocation5 + $0xc] ss:$16 sps:$4 sm:$0xff]   ;;  %v2240_v30 = vld [vmem:[#allocation5] ss:$16 sps:$4 sm:$0xff]   ;;  %v2241_v31 = vld [vmem:[#allocation5 + $0x8] ss:$16 sps:$4 sm:$0xff]  }
  0x6f   : > { %703 = vmatprep.subr.bf16.mxu0 %v2212_v12  ;;  %744 = vmatprep.subr.bf16.mxu1 %v2214_v13  ;;  %v2242_v32 = vld [vmem:[#allocation5 + $0x1e4] ss:$16 sps:$4 sm:$0xff]   ;;  %v2244_v33 = vld [vmem:[#allocation5 + $0x1ec] ss:$16 sps:$4 sm:$0xff]   ;;  %v2246_v34 = vld [vmem:[#allocation5 + $0x1e0] ss:$16 sps:$4 sm:$0xff]  }
  0x70   : > { %v2247_v35 = vld [vmem:[#allocation5 + $0x1e8] ss:$16 sps:$4 sm:$0xff]   ;;  %v2248_v36 = vld [vmem:[#allocation5 + $0x1c4] ss:$16 sps:$4 sm:$0xff]   ;;  %v2250_v37 = vld [vmem:[#allocation5 + $0x1cc] ss:$16 sps:$4 sm:$0xff]  }
  0x71   : > { %v2252_v38 = vld [vmem:[#allocation5 + $0x1c0] ss:$16 sps:$4 sm:$0xff]   ;;  %v2253_v39 = vld [vmem:[#allocation5 + $0x1c8] ss:$16 sps:$4 sm:$0xff]   ;;  %v2254_v40 = vld [vmem:[#allocation5 + $0x1a4] ss:$16 sps:$4 sm:$0xff]  }
  0x72   : > { %704 = vmatpush1.bf16.msra.mxu0 %v2216_v14  ;;  %745 = vmatpush1.bf16.msra.mxu1 %v2217_v15  ;;  %v2256_v41 = vld [vmem:[#allocation5 + $0x1ac] ss:$16 sps:$4 sm:$0xff]   ;;  %v2258_v42 = vld [vmem:[#allocation5 + $0x1a0] ss:$16 sps:$4 sm:$0xff]   ;;  %v2259_v43 = vld [vmem:[#allocation5 + $0x1a8] ss:$16 sps:$4 sm:$0xff]  }
  0x73   : > { %705 = vmatprep.subr.bf16.mxu0 %v2218_v16  ;;  %746 = vmatprep.subr.bf16.mxu1 %v2220_v17  ;;  %v2260_v44 = vld [vmem:[#allocation5 + $0x184] ss:$16 sps:$4 sm:$0xff]   ;;  %v2262_v45 = vld [vmem:[#allocation5 + $0x18c] ss:$16 sps:$4 sm:$0xff]   ;;  %v2264_v46 = vld [vmem:[#allocation5 + $0x180] ss:$16 sps:$4 sm:$0xff]  }
  0x74   : > { %v2265_v47 = vld [vmem:[#allocation5 + $0x188] ss:$16 sps:$4 sm:$0xff]   ;;  %v2266_v49 = vld [vmem:[#allocation5 + $0x164] ss:$16 sps:$4 sm:$0xff]   ;;  %v2268_v50 = vld [vmem:[#allocation5 + $0x16c] ss:$16 sps:$4 sm:$0xff]  }
  0x75   : > { %v283_v48 = vld [vmem:[%s2833_s29] sm:$0xff]  ;;  %v2848_v4 = vshrl.u32 %v350_v3, 7  ;;  %v348_v8 = vld [vmem:[#allocation7] sm:$0xf]  ;;  %s1909_s13 = sshll.u32 %s2829_s23, 4  ;;  %s2114_s16 = sshll.u32 %s2724_s22, 8 }
  0x76   : > { %706 = vmatpush1.bf16.msra.mxu0 %v2222_v18  ;;  %747 = vmatpush1.bf16.msra.mxu1 %v2223_v19  ;;  %v1911_v51 = vcombine.high %v283_v48, %v283_v48  ;;  %v2270_v52 = vld [vmem:[#allocation5 + $0x160] ss:$16 sps:$4 sm:$0xff]   ;;  %v2271_v53 = vld [vmem:[#allocation5 + $0x168] ss:$16 sps:$4 sm:$0xff]   ;;  %v2272_v54 = vld [vmem:[#allocation5 + $0x144] ss:$16 sps:$4 sm:$0xff]   ;;  %v1910_v2 = vcombine.low %v283_v48, %v283_v48  ;;  %s1794_s10 = scalar_lea.hbm %s2943_s5, %s2114_s16 }
  0x77   : > { %707 = vmatprep.subr.bf16.mxu0 %v2224_v20  ;;  %748 = vmatprep.subr.bf16.mxu1 %v2226_v21  ;;  %v2274_v55 = vld [vmem:[#allocation5 + $0x14c] ss:$16 sps:$4 sm:$0xff]   ;;  %v2276_v56 = vld [vmem:[#allocation5 + $0x140] ss:$16 sps:$4 sm:$0xff]   ;;  %v2277_v57 = vld [vmem:[#allocation5 + $0x148] ss:$16 sps:$4 sm:$0xff]  }
  0x78   : > { %729 = vmatprep.mubr.bf16.mxu0 %v1911_v51  ;;  %770 = vmatprep.mubr.bf16.mxu1 %v1911_v51  ;;  %v2278_v58 = vld [vmem:[#allocation5 + $0x124] ss:$16 sps:$4 sm:$0xff]   ;;  %v2280_v59 = vld [vmem:[#allocation5 + $0x12c] ss:$16 sps:$4 sm:$0xff]   ;;  %v2282_v60 = vld [vmem:[#allocation5 + $0x120] ss:$16 sps:$4 sm:$0xff]  }
  0x79   : > { %v2283_v61 = vld [vmem:[#allocation5 + $0x128] ss:$16 sps:$4 sm:$0xff]   ;;  %v2284_v62 = vld [vmem:[#allocation5 + $0x104] ss:$16 sps:$4 sm:$0xff]   ;;  %v2286_v63 = vld [vmem:[#allocation5 + $0x10c] ss:$16 sps:$4 sm:$0xff]  }
  0x7a   : > { %708 = vmatpush1.bf16.msra.mxu0 %v2228_v22  ;;  %749 = vmatpush1.bf16.msra.mxu1 %v2229_v23  ;;  %v2288_v0 = vld [vmem:[#allocation5 + $0x100] ss:$16 sps:$4 sm:$0xff]   ;;  %v2289_v1 = vld [vmem:[#allocation5 + $0x108] ss:$16 sps:$4 sm:$0xff]   ;;  %v352_v5 = vsub.s32 0, %v2848_v4  ;;  %v360_v6 = vsub.s32 2, %v2848_v4 }
  0x7b   : > { %709 = vmatprep.subr.bf16.mxu0 %v2230_v24  ;;  %750 = vmatprep.subr.bf16.mxu1 %v2232_v25  ;;  %v356_v7 = vsub.s32 1, %v2848_v4  ;;  %v364_v12 = vsub.s32 3, %v2848_v4  ;;  %v2319_v48 = vld [vmem:[#allocation8 + $0x260] ss:$16 sps:$4 sm:$0xff]   ;;  %s282_s15 = scalar_lea.vmem [#allocation10], %s1909_s13  ;;  %s1782_s9 = scalar_lea.sflag [#allocation4], %s2829_s23 }
  0x7c   : > { %v353_v9 = vrot.slane %v348_v8, %v352_v5  ;;  %v361_v10 = vrot.slane %v348_v8, %v360_v6  ;;  %v2322_v51 = vld [vmem:[#allocation8 + $0x40] ss:$16 sps:$4 sm:$0xff]   ;;  %s1796_s17 = sshll.u32 %s282_s15, 4  ;;  %p2961_p6 = scmp.ne.s32.totalorder %s2953_s7, 0  ;;  %s1797_s17 = int_to_ptr.vmem [resolvable:$true] %s1796_s17 }
  0x7d   : > { %v357_v11 = vrot.slane %v348_v8, %v356_v7  ;;  %v365_v20 = vrot.slane %v348_v8, %v364_v12  ;;  %v2346_v3 = vld [vmem:[#allocation8 + $0x1c0] ss:$16 sps:$4 sm:$0xff]   ;;  %s2592_s11 = scalar_lea.vmem %s1797_s17, 256  ;;  %s2672_s14 = smov [#allocation10]  }
  0x7e   : > { %710 = vmatpush1.bf16.msra.mxu0 %v2234_v26  ;;  %751 = vmatpush1.bf16.msra.mxu1 %v2235_v27  ;;  %v2349_v8 = vld [vmem:[#allocation8 + $0x3c0] ss:$16 sps:$4 sm:$0xff]   ;;  %p2593_p4 = scmp.ne.s32.totalorder %s1797_s17, %s2592_s11  ;;  %s2596_s22 = sshll.u32 %s2672_s14, 4  ;;  %s2597_s22 = int_to_ptr.vmem [resolvable:$false] %s2596_s22 }
  0x7f   : > { %711 = vmatprep.subr.bf16.mxu0 %v2236_v28  ;;  %752 = vmatprep.subr.bf16.mxu1 %v2238_v29  ;;  %v2292_v29 = vld [vmem:[#allocation8 + $0xe0] ss:$16 sps:$4 sm:$0xff]   ;;  %s2598_s27 = scalar_lea.vmem %s2597_s22, 512  ;;  %p2599_p5 = scmp.lt.s32.totalorder %s1797_s17, %s2597_s22 }
  0x80   : > { %p2594_p12 = pnand %p2593_p4, %p2961_p6  ;;  %p2600_p3 = scmp.lt.s32.totalorder %s2598_s27, %s2592_s11 }
  0x82   : > { %712 = vmatpush1.bf16.msra.mxu0 %v2240_v30  ;;  %753 = vmatpush1.bf16.msra.mxu1 %v2241_v31  ;;  %v2294_v30 = vld [vmem:[#allocation8 + $0xe4] ss:$16 sps:$4 sm:$0xff]   ;;  %v2295_v31 = vld [vmem:[#allocation8 + $0x2e0] ss:$16 sps:$4 sm:$0xff]   ;;  %p2595_p0 = pneg %p2594_p12  ;;  %p2601_p7 = por %p2600_p3, %p2599_p5 }
  0x83   : > { %713 = vmatprep.subr.bf16.mxu0 %v2242_v32  ;;  %754 = vmatprep.subr.bf16.mxu1 %v2244_v33  ;;  %v2297_v32 = vld [vmem:[#allocation8 + $0x2e4] ss:$16 sps:$4 sm:$0xff]  }
  0x84   : > { %v2300_v33 = vld [vmem:[#allocation8 + $0xc4] ss:$16 sps:$4 sm:$0xff]   ;;  %p2602_p9 = pnand %p2601_p7, %p2595_p0 }
  0x86   : > { %714 = vmatpush2.bf16.msra.mxu0 %v2246_v34  ;;  %755 = vmatpush2.bf16.msra.mxu1 %v2247_v35  ;;  %v2303_v34 = vld [vmem:[#allocation8 + $0x2c4] ss:$16 sps:$4 sm:$0xff]   ;;  %v2298_v35 = vld [vmem:[#allocation8 + $0xc0] ss:$16 sps:$4 sm:$0xff]  }
  0x87   : > { %715 = vmatprep.subr.bf16.mxu0 %v2248_v36  ;;  %756 = vmatprep.subr.bf16.mxu1 %v2250_v37  ;;  %v2301_v36 = vld [vmem:[#allocation8 + $0x2c0] ss:$16 sps:$4 sm:$0xff]   ;;  %v2306_v37 = vld [vmem:[#allocation8 + $0xa4] ss:$16 sps:$4 sm:$0xff]  }
  0x8a   : > { %716 = vmatpush2.bf16.msra.mxu0 %v2252_v38  ;;  %757 = vmatpush2.bf16.msra.mxu1 %v2253_v39  ;;  %v2309_v38 = vld [vmem:[#allocation8 + $0x2a4] ss:$16 sps:$4 sm:$0xff]   ;;  %v2304_v39 = vld [vmem:[#allocation8 + $0xa0] ss:$16 sps:$4 sm:$0xff]  }
  0x8b   : > { %717 = vmatprep.subr.bf16.mxu0 %v2254_v40  ;;  %758 = vmatprep.subr.bf16.mxu1 %v2256_v41  ;;  %v2307_v40 = vld [vmem:[#allocation8 + $0x2a0] ss:$16 sps:$4 sm:$0xff]   ;;  %v2312_v41 = vld [vmem:[#allocation8 + $0x84] ss:$16 sps:$4 sm:$0xff]  }
  0x8e   : > { %718 = vmatpush2.bf16.msra.mxu0 %v2258_v42  ;;  %759 = vmatpush2.bf16.msra.mxu1 %v2259_v43  ;;  %v2315_v42 = vld [vmem:[#allocation8 + $0x284] ss:$16 sps:$4 sm:$0xff]   ;;  %v2310_v43 = vld [vmem:[#allocation8 + $0x80] ss:$16 sps:$4 sm:$0xff]  }
  0x8f   : > { %719 = vmatprep.subr.bf16.mxu0 %v2260_v44  ;;  %760 = vmatprep.subr.bf16.mxu1 %v2262_v45  ;;  %v2313_v44 = vld [vmem:[#allocation8 + $0x280] ss:$16 sps:$4 sm:$0xff]   ;;  %v2318_v45 = vld [vmem:[#allocation8 + $0x64] ss:$16 sps:$4 sm:$0xff]  }
  0x92   : > { %720 = vmatpush2.bf16.msra.mxu0 %v2264_v46  ;;  %761 = vmatpush2.bf16.msra.mxu1 %v2265_v47  ;;  %v2321_v46 = vld [vmem:[#allocation8 + $0x264] ss:$16 sps:$4 sm:$0xff]   ;;  %v2316_v47 = vld [vmem:[#allocation8 + $0x60] ss:$16 sps:$4 sm:$0xff]  }
  0x93   : > { %721 = vmatprep.subr.bf16.mxu0 %v2266_v49  ;;  %762 = vmatprep.subr.bf16.mxu1 %v2268_v50  ;;  %v2324_v49 = vld [vmem:[#allocation8 + $0x44] ss:$16 sps:$4 sm:$0xff]  }
  0x94   : > { %v2327_v50 = vld [vmem:[#allocation8 + $0x244] ss:$16 sps:$4 sm:$0xff]  }
  0x96   : > { %722 = vmatpush2.bf16.msra.mxu0 %v2270_v52  ;;  %763 = vmatpush2.bf16.msra.mxu1 %v2271_v53  ;;  %v2325_v52 = vld [vmem:[#allocation8 + $0x240] ss:$16 sps:$4 sm:$0xff]   ;;  %v2330_v53 = vld [vmem:[#allocation8 + $0x24] ss:$16 sps:$4 sm:$0xff]  }
  0x97   : > { %723 = vmatprep.subr.bf16.mxu0 %v2272_v54  ;;  %764 = vmatprep.subr.bf16.mxu1 %v2274_v55  ;;  %v2333_v54 = vld [vmem:[#allocation8 + $0x224] ss:$16 sps:$4 sm:$0xff]   ;;  %v2328_v55 = vld [vmem:[#allocation8 + $0x20] ss:$16 sps:$4 sm:$0xff]  }
  0x9a   : > { %724 = vmatpush2.bf16.msra.mxu0 %v2276_v56  ;;  %765 = vmatpush2.bf16.msra.mxu1 %v2277_v57  ;;  %v2331_v56 = vld [vmem:[#allocation8 + $0x220] ss:$16 sps:$4 sm:$0xff]   ;;  %v2336_v57 = vld [vmem:[#allocation8 + $0x4] ss:$16 sps:$4 sm:$0xff]  }
  0x9b   : > { %725 = vmatprep.subr.bf16.mxu0 %v2278_v58  ;;  %766 = vmatprep.subr.bf16.mxu1 %v2280_v59  ;;  %v2339_v58 = vld [vmem:[#allocation8 + $0x204] ss:$16 sps:$4 sm:$0xff]   ;;  %v2334_v59 = vld [vmem:[#allocation8] ss:$16 sps:$4 sm:$0xff]  }
  0x9e   : > { %726 = vmatpush2.bf16.msra.mxu0 %v2282_v60  ;;  %767 = vmatpush2.bf16.msra.mxu1 %v2283_v61  ;;  %v2337_v60 = vld [vmem:[#allocation8 + $0x200] ss:$16 sps:$4 sm:$0xff]   ;;  %v2342_v61 = vld [vmem:[#allocation8 + $0x1e4] ss:$16 sps:$4 sm:$0xff]  }
  0x9f   : > { %727 = vmatprep.subr.bf16.mxu0 %v2284_v62  ;;  %768 = vmatprep.subr.bf16.mxu1 %v2286_v63  ;;  %v2345_v62 = vld [vmem:[#allocation8 + $0x3e4] ss:$16 sps:$4 sm:$0xff]   ;;  %v2340_v63 = vld [vmem:[#allocation8 + $0x1e0] ss:$16 sps:$4 sm:$0xff]  }
  0xa2   : > { %728 = vmatpush2.bf16.msra.mxu0 %v2288_v0  ;;  %769 = vmatpush2.bf16.msra.mxu1 %v2289_v1  ;;  %v2343_v0 = vld [vmem:[#allocation8 + $0x3e0] ss:$16 sps:$4 sm:$0xff]   ;;  %v2348_v1 = vld [vmem:[#allocation8 + $0x1c4] ss:$16 sps:$4 sm:$0xff]  }
  0xa3   : > { %1599 = vmatprep.subr.bf16.mxu0 %v2294_v30  ;;  %1640 = vmatprep.subr.bf16.mxu1 %v2297_v32  ;;  %v2363_v32 = vld [vmem:[#allocation8 + $0x384] ss:$16 sps:$4 sm:$0xff]  }
  0xa5   : > { %730 = vmatmul.mubr.bf16.vlgmr.msra.gmra.mxu0 %v1910_v2  ;;  %771 = vmatmul.mubr.bf16.vlgmr.msra.gmra.mxu1 %v1910_v2  ;;  %v2351_v2 = vld [vmem:[#allocation8 + $0x3c4] ss:$16 sps:$4 sm:$0xff]  }
  0xa6   : > { %1600 = vmatpush1.bf16.msra.mxu0 %v2292_v29  ;;  %1641 = vmatpush1.bf16.msra.mxu1 %v2295_v31  ;;  %v2360_v31 = vld [vmem:[#allocation8 + $0x184] ss:$16 sps:$4 sm:$0xff]  }
  0xa7   : > { %1601 = vmatprep.subr.bf16.mxu0 %v2300_v33  ;;  %1642 = vmatprep.subr.bf16.mxu1 %v2303_v34  ;;  %v2361_v33 = vld [vmem:[#allocation8 + $0x380] ss:$16 sps:$4 sm:$0xff]   ;;  %v2369_v34 = vld [vmem:[#allocation8 + $0x364] ss:$16 sps:$4 sm:$0xff]  }
  0xaa   : > { %1602 = vmatpush1.bf16.msra.mxu0 %v2298_v35  ;;  %1643 = vmatpush1.bf16.msra.mxu1 %v2301_v36  ;;  %v2372_v35 = vld [vmem:[#allocation8 + $0x144] ss:$16 sps:$4 sm:$0xff]  }
  0xab   : > { %1603 = vmatprep.subr.bf16.mxu0 %v2306_v37  ;;  %1644 = vmatprep.subr.bf16.mxu1 %v2309_v38  ;;  %v2375_v36 = vld [vmem:[#allocation8 + $0x344] ss:$16 sps:$4 sm:$0xff]   ;;  %v2370_v37 = vld [vmem:[#allocation8 + $0x140] ss:$16 sps:$4 sm:$0xff]  }
  0xac   : > { %v2373_v38 = vld [vmem:[#allocation8 + $0x340] ss:$16 sps:$4 sm:$0xff]  }
  0xae   : > { %1604 = vmatpush1.bf16.msra.mxu0 %v2304_v39  ;;  %1645 = vmatpush1.bf16.msra.mxu1 %v2307_v40  ;;  %v2378_v39 = vld [vmem:[#allocation8 + $0x124] ss:$16 sps:$4 sm:$0xff]  }
  0xaf   : > { %1605 = vmatprep.subr.bf16.mxu0 %v2312_v41  ;;  %1646 = vmatprep.subr.bf16.mxu1 %v2315_v42  ;;  %v2381_v40 = vld [vmem:[#allocation8 + $0x324] ss:$16 sps:$4 sm:$0xff]   ;;  %v2376_v41 = vld [vmem:[#allocation8 + $0x120] ss:$16 sps:$4 sm:$0xff]  }
  0xb0   : > { %v2379_v42 = vld [vmem:[#allocation8 + $0x320] ss:$16 sps:$4 sm:$0xff]  }
  0xb2   : > { %1606 = vmatpush1.bf16.msra.mxu0 %v2310_v43  ;;  %1647 = vmatpush1.bf16.msra.mxu1 %v2313_v44  ;;  %v2384_v43 = vld [vmem:[#allocation8 + $0x104] ss:$16 sps:$4 sm:$0xff]  }
  0xb3   : > { %1607 = vmatprep.subr.bf16.mxu0 %v2318_v45  ;;  %1648 = vmatprep.subr.bf16.mxu1 %v2321_v46  ;;  %v2387_v44 = vld [vmem:[#allocation8 + $0x304] ss:$16 sps:$4 sm:$0xff]   ;;  %v2382_v45 = vld [vmem:[#allocation8 + $0x100] ss:$16 sps:$4 sm:$0xff]  }
  0xb4   : > { %v2385_v46 = vld [vmem:[#allocation8 + $0x300] ss:$16 sps:$4 sm:$0xff]  }
  0xb6   : > { %1608 = vmatpush1.bf16.msra.mxu0 %v2316_v47  ;;  %1649 = vmatpush1.bf16.msra.mxu1 %v2319_v48  ;;  %v2390_v47 = vld [vmem:[#allocation8 + $0xec] ss:$16 sps:$4 sm:$0xff]  }
  0xb7   : > { %1609 = vmatprep.subr.bf16.mxu0 %v2324_v49  ;;  %1650 = vmatprep.subr.bf16.mxu1 %v2327_v50  ;;  %v2393_v48 = vld [vmem:[#allocation8 + $0x2ec] ss:$16 sps:$4 sm:$0xff]  }
  0xba   : > { %1610 = vmatpush1.bf16.msra.mxu0 %v2322_v51  ;;  %1651 = vmatpush1.bf16.msra.mxu1 %v2325_v52 }
  0xbb   : > { %1611 = vmatprep.subr.bf16.mxu0 %v2330_v53  ;;  %1652 = vmatprep.subr.bf16.mxu1 %v2333_v54 }
  0xbe   : > { %1612 = vmatpush1.bf16.msra.mxu0 %v2328_v55  ;;  %1653 = vmatpush1.bf16.msra.mxu1 %v2331_v56 }
  0xbf   : > { %1613 = vmatprep.subr.bf16.mxu0 %v2336_v57  ;;  %1654 = vmatprep.subr.bf16.mxu1 %v2339_v58 }
  0xc2   : > { %1614 = vmatpush1.bf16.msra.mxu0 %v2334_v59  ;;  %1655 = vmatpush1.bf16.msra.mxu1 %v2337_v60  ;;  %v2388_v59 = vld [vmem:[#allocation8 + $0xe8] ss:$16 sps:$4 sm:$0xff]  }
  0xc3   : > { %1615 = vmatprep.subr.bf16.mxu0 %v2342_v61  ;;  %1656 = vmatprep.subr.bf16.mxu1 %v2345_v62  ;;  %v2391_v60 = vld [vmem:[#allocation8 + $0x2e8] ss:$16 sps:$4 sm:$0xff]  }
  0xc6   : > { %1616 = vmatpush2.bf16.msra.mxu0 %v2340_v63  ;;  %1657 = vmatpush2.bf16.msra.mxu1 %v2343_v0  ;;  %v2396_v63 = vld [vmem:[#allocation8 + $0xcc] ss:$16 sps:$4 sm:$0xff]  }
  0xc7   : > { %1617 = vmatprep.subr.bf16.mxu0 %v2348_v1  ;;  %1658 = vmatprep.subr.bf16.mxu1 %v2351_v2  ;;  %v2399_v0 = vld [vmem:[#allocation8 + $0x2cc] ss:$16 sps:$4 sm:$0xff]   ;;  %v2394_v1 = vld [vmem:[#allocation8 + $0xc8] ss:$16 sps:$4 sm:$0xff]  }
  0xc8   : > { %v2397_v2 = vld [vmem:[#allocation8 + $0x2c8] ss:$16 sps:$4 sm:$0xff]  }
  0xca   : > { %1618 = vmatpush2.bf16.msra.mxu0 %v2346_v3  ;;  %1659 = vmatpush2.bf16.msra.mxu1 %v2349_v8  ;;  %v2402_v3 = vld [vmem:[#allocation8 + $0xac] ss:$16 sps:$4 sm:$0xff]  }
  0xcb   : > { %v2405_v8 = vld [vmem:[#allocation8 + $0x2ac] ss:$16 sps:$4 sm:$0xff]  }
 0x165   : > { %v731_v13 = vpop.f32.mrf.mxu0  ;;  %v772_v14 = vpop.f32.mrf.mxu1 }
 0x166   : > { %v2860_v17 = vadd.f32 %v731_v13, %v353_v9  ;;  %v2862_v18 = vadd.f32 %v772_v14, %v361_v10  ;;  %v2354_v9 = vld [vmem:[#allocation8 + $0x1a4] ss:$16 sps:$4 sm:$0xff]   ;;  %v2355_v13 = vld [vmem:[#allocation8 + $0x3a0] ss:$16 sps:$4 sm:$0xff]  }
 0x167   : > { %v733_v15 = vpop.f32.mrf.mxu0  ;;  %v774_v16 = vpop.f32.mrf.mxu1  ;;  %v2357_v10 = vld [vmem:[#allocation8 + $0x3a4] ss:$16 sps:$4 sm:$0xff]   ;;  %1619 = vmatprep.subr.bf16.mxu0 %v2354_v9  ;;  %v2400_v9 = vld [vmem:[#allocation8 + $0xa8] ss:$16 sps:$4 sm:$0xff]  }
 0x168   : > { %v2864_v19 = vadd.f32 %v733_v15, %v357_v11  ;;  %v2870_v26 = vadd.f32 %v774_v16, %v365_v20  ;;  %v2352_v11 = vld [vmem:[#allocation8 + $0x1a0] ss:$16 sps:$4 sm:$0xff]   ;;  %1660 = vmatprep.subr.bf16.mxu1 %v2357_v10  ;;  %v2403_v10 = vld [vmem:[#allocation8 + $0x2a8] ss:$16 sps:$4 sm:$0xff]  }
 0x169   : > { %v735_v21 = vpop.f32.mrf.mxu0  ;;  %v776_v22 = vpop.f32.mrf.mxu1  ;;  %1620 = vmatpush2.bf16.msra.mxu0 %v2352_v11  ;;  %1661 = vmatpush2.bf16.msra.mxu1 %v2355_v13  ;;  %v2408_v11 = vld [vmem:[#allocation8 + $0x8c] ss:$16 sps:$4 sm:$0xff]  }
 0x16a   : > { %v779_v23 = vadd.f32 %v2864_v19, %v2860_v17  ;;  %1621 = vmatprep.subr.bf16.mxu0 %v2360_v31  ;;  %1662 = vmatprep.subr.bf16.mxu1 %v2363_v32  ;;  %v2411_v13 = vld [vmem:[#allocation8 + $0x28c] ss:$16 sps:$4 sm:$0xff]   ;;  %v2427_v31 = vld [vmem:[#allocation8 + $0x228] ss:$16 sps:$4 sm:$0xff]  }
 0x16b   : > { %v736_v24 = vpop.f32.mrf.mxu0  ;;  %v777_v25 = vpop.f32.mrf.mxu1  ;;  %v2432_v32 = vld [vmem:[#allocation8 + $0xc] ss:$16 sps:$4 sm:$0xff]  }
 0x16c   : > { %v780_v27 = vadd.f32 %v779_v23, %v2862_v18 }
 0x16d   : > { %1663 = vmatpush2.bf16.msra.mxu1 %v2361_v33  ;;  %v2430_v33 = vld [vmem:[#allocation8 + $0x8] ss:$16 sps:$4 sm:$0xff]  }
 0x16e   : > { %v781_v28 = vadd.f32 %v780_v27, %v2870_v26  ;;  %1664 = vmatprep.subr.bf16.mxu1 %v2369_v34  ;;  %v2436_v34 = vld [vmem:[#allocation8 + $0x1e8] ss:$16 sps:$4 sm:$0xff]  }
 0x170   : > { %782 = vadd.xlane.f32.xlu0 %v781_v28 }
 0x1f9   : > { %v783_v14 = vpop.xlane.xlu0 %782 }
 0x1fa   : > { %v784_v15 = vmul.f32 0.001953125, %v783_v14  ;;  %v2406_v14 = vld [vmem:[#allocation8 + $0x88] ss:$16 sps:$4 sm:$0xff]  }
 0x1fc   : > { %v2875_v16 = vsub.f32 %v2860_v17, %v784_v15  ;;  %v786_v20 = vsub.f32 %v2864_v19, %v784_v15  ;;  %v787_v21 = vsub.f32 %v2862_v18, %v784_v15  ;;  %v788_v22 = vsub.f32 %v2870_v26, %v784_v15  ;;  %v2358_v17 = vld [vmem:[#allocation8 + $0x180] ss:$16 sps:$4 sm:$0xff]   ;;  %v2366_v19 = vld [vmem:[#allocation8 + $0x164] ss:$16 sps:$4 sm:$0xff]   ;;  %v2409_v15 = vld [vmem:[#allocation8 + $0x288] ss:$16 sps:$4 sm:$0xff]  }
 0x1fd   : > { %1622 = vmatpush2.bf16.msra.mxu0 %v2358_v17  ;;  %v2364_v18 = vld [vmem:[#allocation8 + $0x160] ss:$16 sps:$4 sm:$0xff]   ;;  %v2435_v17 = vld [vmem:[#allocation8 + $0x20c] ss:$16 sps:$4 sm:$0xff]  }
 0x1fe   : > { %v789_v23 = vmul.f32 %v2875_v16, %v2875_v16  ;;  %v790_v24 = vmul.f32 %v786_v20, %v786_v20  ;;  %v791_v25 = vmul.f32 %v787_v21, %v787_v21  ;;  %v792_v28 = vmul.f32 %v788_v22, %v788_v22  ;;  %v2367_v26 = vld [vmem:[#allocation8 + $0x360] ss:$16 sps:$4 sm:$0xff]   ;;  %1623 = vmatprep.subr.bf16.mxu0 %v2366_v19  ;;  %v2438_v19 = vld [vmem:[#allocation8 + $0x1ec] ss:$16 sps:$4 sm:$0xff]  }
 0x1ff   : > { %1665 = vmatpush2.bf16.msra.mxu1 %v2367_v26  ;;  %v2441_v26 = vld [vmem:[#allocation8 + $0x3ec] ss:$16 sps:$4 sm:$0xff]  }
 0x200   : > { %v793_v27 = vadd.f32 %v790_v24, %v789_v23  ;;  %1666 = vmatprep.subr.bf16.mxu1 %v2375_v36  ;;  %v2420_v23 = vld [vmem:[#allocation8 + $0x4c] ss:$16 sps:$4 sm:$0xff]  }
 0x201   : > { %1624 = vmatpush2.bf16.msra.mxu0 %v2364_v18  ;;  %v2423_v24 = vld [vmem:[#allocation8 + $0x24c] ss:$16 sps:$4 sm:$0xff]   ;;  %v2433_v18 = vld [vmem:[#allocation8 + $0x208] ss:$16 sps:$4 sm:$0xff]  }
 0x202   : > { %v794_v29 = vadd.f32 %v793_v27, %v791_v25  ;;  %1625 = vmatprep.subr.bf16.mxu0 %v2372_v35  ;;  %v2418_v25 = vld [vmem:[#allocation8 + $0x48] ss:$16 sps:$4 sm:$0xff]   ;;  %v2444_v36 = vld [vmem:[#allocation8 + $0x1cc] ss:$16 sps:$4 sm:$0xff]  }
 0x203   : > { %1667 = vmatpush2.bf16.msra.mxu1 %v2373_v38  ;;  %v2421_v27 = vld [vmem:[#allocation8 + $0x248] ss:$16 sps:$4 sm:$0xff]  }
 0x204   : > { %v795_v30 = vadd.f32 %v794_v29, %v792_v28  ;;  %1668 = vmatprep.subr.bf16.mxu1 %v2381_v40  ;;  %v2426_v28 = vld [vmem:[#allocation8 + $0x2c] ss:$16 sps:$4 sm:$0xff]   ;;  %v2439_v35 = vld [vmem:[#allocation8 + $0x3e8] ss:$16 sps:$4 sm:$0xff]  }
 0x205   : > { %1626 = vmatpush2.bf16.msra.mxu0 %v2370_v37  ;;  %v2429_v29 = vld [vmem:[#allocation8 + $0x22c] ss:$16 sps:$4 sm:$0xff]   ;;  %v2442_v38 = vld [vmem:[#allocation8 + $0x1c8] ss:$16 sps:$4 sm:$0xff]  }
 0x206   : > { %796 = vadd.xlane.f32.xlu0 %v795_v30  ;;  %1627 = vmatprep.subr.bf16.mxu0 %v2378_v39  ;;  %v2424_v30 = vld [vmem:[#allocation8 + $0x28] ss:$16 sps:$4 sm:$0xff]   ;;  %v2447_v37 = vld [vmem:[#allocation8 + $0x3cc] ss:$16 sps:$4 sm:$0xff]  }
 0x207   : > { %1669 = vmatpush2.bf16.msra.mxu1 %v2379_v42  ;;  %v2445_v39 = vld [vmem:[#allocation8 + $0x3c8] ss:$16 sps:$4 sm:$0xff]   ;;  %v2450_v40 = vld [vmem:[#allocation8 + $0x1ac] ss:$16 sps:$4 sm:$0xff]  }
 0x208   : > { %1670 = vmatprep.subr.bf16.mxu1 %v2387_v44  ;;  %v2448_v42 = vld [vmem:[#allocation8 + $0x1a8] ss:$16 sps:$4 sm:$0xff]   ;;  %v2456_v44 = vld [vmem:[#allocation8 + $0x18c] ss:$16 sps:$4 sm:$0xff]  }
 0x209   : > { %1628 = vmatpush2.bf16.msra.mxu0 %v2376_v41  ;;  %v2453_v41 = vld [vmem:[#allocation8 + $0x3ac] ss:$16 sps:$4 sm:$0xff]  }
 0x20a   : > { %1629 = vmatprep.subr.bf16.mxu0 %v2384_v43  ;;  %v2451_v43 = vld [vmem:[#allocation8 + $0x3a8] ss:$16 sps:$4 sm:$0xff]  }
 0x20b   : > { %1671 = vmatpush2.bf16.msra.mxu1 %v2385_v46  ;;  %v2454_v46 = vld [vmem:[#allocation8 + $0x188] ss:$16 sps:$4 sm:$0xff]  }
 0x20c   : > { %1722 = vmatprep.subr.bf16.mxu1 %v2393_v48  ;;  %v2462_v48 = vld [vmem:[#allocation8 + $0x16c] ss:$16 sps:$4 sm:$0xff]  }
 0x20d   : > { %1630 = vmatpush2.bf16.msra.mxu0 %v2382_v45  ;;  %v2459_v45 = vld [vmem:[#allocation8 + $0x38c] ss:$16 sps:$4 sm:$0xff]  }
 0x20e   : > { %1681 = vmatprep.subr.bf16.mxu0 %v2390_v47  ;;  %v2457_v47 = vld [vmem:[#allocation8 + $0x388] ss:$16 sps:$4 sm:$0xff]  }
 0x28f   : > { %v797_v49 = vpop.xlane.xlu0 %796 }
 0x290   : > { %v798_v50 = vmul.f32 0.001953125, %v797_v49  ;;  %v2465_v49 = vld [vmem:[#allocation8 + $0x36c] ss:$16 sps:$4 sm:$0xff]  }
 0x292   : > { %v799_v51 = vadd.f32 1e-05, %v798_v50  ;;  %v2460_v50 = vld [vmem:[#allocation8 + $0x168] ss:$16 sps:$4 sm:$0xff]  }
 0x294   : > { %2484 = vrsqrt.f32 %v799_v51  ;;  %v2463_v51 = vld [vmem:[#allocation8 + $0x368] ss:$16 sps:$4 sm:$0xff]  }
 0x2a1   : > { %v2485_v52 = vpop.eup %2484 }
 0x2a2   : > { %v802_v53 = vmul.f32 %v2485_v52, %v786_v20  ;;  %v804_v54 = vmul.f32 %v2485_v52, %v788_v22  ;;  %v801_v55 = vmul.f32 %v2485_v52, %v2875_v16  ;;  %v803_v56 = vmul.f32 %v2485_v52, %v787_v21  ;;  %v2414_v16 = vld [vmem:[#allocation8 + $0x6c] ss:$16 sps:$4 sm:$0xff]   ;;  %v2412_v21 = vld [vmem:[#allocation8 + $0x68] ss:$16 sps:$4 sm:$0xff]  }
 0x2a3   : > { %v2417_v20 = vld [vmem:[#allocation8 + $0x26c] ss:$16 sps:$4 sm:$0xff]   ;;  %v2415_v22 = vld [vmem:[#allocation8 + $0x268] ss:$16 sps:$4 sm:$0xff]  }
 0x2a4   : > { %v806_v57 = vpack.c.bf16 %v802_v53, %v802_v53  ;;  %v808_v58 = vpack.c.bf16 %v804_v54, %v804_v54  ;;  %v2883_v61 = vpack.c.bf16 %v801_v55, %v801_v55  ;;  %v2885_v62 = vpack.c.bf16 %v803_v56, %v803_v56  ;;  %v2468_v52 = vld [vmem:[#allocation8 + $0x14c] ss:$16 sps:$4 sm:$0xff]   ;;  %v2466_v54 = vld [vmem:[#allocation8 + $0x148] ss:$16 sps:$4 sm:$0xff]  }
 0x2a5   : > { %v2471_v53 = vld [vmem:[#allocation8 + $0x34c] ss:$16 sps:$4 sm:$0xff]   ;;  %v2469_v55 = vld [vmem:[#allocation8 + $0x348] ss:$16 sps:$4 sm:$0xff]  }
 0x2a6   : > { %1631 = vmatprep.mubr.bf16.mxu0 %v806_v57  ;;  %1672 = vmatprep.mubr.bf16.mxu1 %v808_v58  ;;  %v2474_v56 = vld [vmem:[#allocation8 + $0x12c] ss:$16 sps:$4 sm:$0xff]  }
 0x2a7   : > { %1632 = vmatmul.mubr.bf16.vlgmr.msra.gmra.mxu0 %v2883_v61  ;;  %1673 = vmatmul.mubr.bf16.vlgmr.msra.gmra.mxu1 %v2885_v62 }
 0x2a8   : > { %1682 = vmatpush1.bf16.msra.mxu0 %v2388_v59  ;;  %1723 = vmatpush1.bf16.msra.mxu1 %v2391_v60  ;;  %v2475_v59 = vld [vmem:[#allocation8 + $0x328] ss:$16 sps:$4 sm:$0xff]   ;;  %v2480_v60 = vld [vmem:[#allocation8 + $0x10c] ss:$16 sps:$4 sm:$0xff]  }
 0x2a9   : > { %1713 = vmatprep.mubr.bf16.mxu0 %v806_v57  ;;  %1754 = vmatprep.mubr.bf16.mxu1 %v808_v58  ;;  %v2477_v57 = vld [vmem:[#allocation8 + $0x32c] ss:$16 sps:$4 sm:$0xff]   ;;  %v2472_v58 = vld [vmem:[#allocation8 + $0x128] ss:$16 sps:$4 sm:$0xff]  }
 0x2aa   : > { %1683 = vmatprep.subr.bf16.mxu0 %v2396_v63  ;;  %1724 = vmatprep.subr.bf16.mxu1 %v2399_v0  ;;  %v2483_v63 = vld [vmem:[#allocation8 + $0x30c] ss:$16 sps:$4 sm:$0xff]   ;;  %v2478_v0 = vld [vmem:[#allocation8 + $0x108] ss:$16 sps:$4 sm:$0xff]  }
 0x2ac   : > { %1684 = vmatpush1.bf16.msra.mxu0 %v2394_v1  ;;  %1725 = vmatpush1.bf16.msra.mxu1 %v2397_v2  ;;  %v2481_v1 = vld [vmem:[#allocation8 + $0x308] ss:$16 sps:$4 sm:$0xff]   ;;  %v937_v2 = vld [vmem:[%s2942_s4] sm:$0xf] }
 0x2ad   : > { %1685 = vmatprep.subr.bf16.mxu0 %v2402_v3  ;;  %1726 = vmatprep.subr.bf16.mxu1 %v2405_v8  ;;  %v942_v3 = vrot.slane %v937_v2, %v352_v5  ;;  %v946_v8 = vrot.slane %v937_v2, %v356_v7  ;;  %v950_v5 = vrot.slane %v937_v2, %v360_v6 }
 0x2ae   : > { %v954_v7 = vrot.slane %v937_v2, %v364_v12 }
 0x2b0   : > { %1686 = vmatpush1.bf16.msra.mxu0 %v2400_v9  ;;  %1727 = vmatpush1.bf16.msra.mxu1 %v2403_v10 }
 0x2b1   : > { %1687 = vmatprep.subr.bf16.mxu0 %v2408_v11  ;;  %1728 = vmatprep.subr.bf16.mxu1 %v2411_v13 }
 0x2b4   : > { %1688 = vmatpush1.bf16.msra.mxu0 %v2406_v14  ;;  %1729 = vmatpush1.bf16.msra.mxu1 %v2409_v15 }
 0x2b5   : > { %1689 = vmatprep.subr.bf16.mxu0 %v2414_v16  ;;  %1730 = vmatprep.subr.bf16.mxu1 %v2417_v20 }
 0x2b8   : > { %1690 = vmatpush1.bf16.msra.mxu0 %v2412_v21  ;;  %1731 = vmatpush1.bf16.msra.mxu1 %v2415_v22 }
 0x2b9   : > { %1691 = vmatprep.subr.bf16.mxu0 %v2420_v23  ;;  %1732 = vmatprep.subr.bf16.mxu1 %v2423_v24 }
 0x2bc   : > { %1692 = vmatpush1.bf16.msra.mxu0 %v2418_v25  ;;  %1733 = vmatpush1.bf16.msra.mxu1 %v2421_v27 }
 0x2bd   : > { %1693 = vmatprep.subr.bf16.mxu0 %v2426_v28  ;;  %1734 = vmatprep.subr.bf16.mxu1 %v2429_v29 }
 0x2c0   : > { %1694 = vmatpush1.bf16.msra.mxu0 %v2424_v30  ;;  %1735 = vmatpush1.bf16.msra.mxu1 %v2427_v31 }
 0x2c1   : > { %1695 = vmatprep.subr.bf16.mxu0 %v2432_v32  ;;  %1736 = vmatprep.subr.bf16.mxu1 %v2435_v17 }
 0x2c4   : > { %1696 = vmatpush1.bf16.msra.mxu0 %v2430_v33  ;;  %1737 = vmatpush1.bf16.msra.mxu1 %v2433_v18 }
 0x2c5   : > { %1697 = vmatprep.subr.bf16.mxu0 %v2438_v19  ;;  %1738 = vmatprep.subr.bf16.mxu1 %v2441_v26 }
 0x2c8   : > { %1698 = vmatpush2.bf16.msra.mxu0 %v2436_v34  ;;  %1739 = vmatpush2.bf16.msra.mxu1 %v2439_v35 }
 0x2c9   : > { %1699 = vmatprep.subr.bf16.mxu0 %v2444_v36  ;;  %1740 = vmatprep.subr.bf16.mxu1 %v2447_v37 }
 0x2cc   : > { %1700 = vmatpush2.bf16.msra.mxu0 %v2442_v38  ;;  %1741 = vmatpush2.bf16.msra.mxu1 %v2445_v39 }
 0x2cd   : > { %1701 = vmatprep.subr.bf16.mxu0 %v2450_v40  ;;  %1742 = vmatprep.subr.bf16.mxu1 %v2453_v41 }
 0x2d0   : > { %1702 = vmatpush2.bf16.msra.mxu0 %v2448_v42  ;;  %1743 = vmatpush2.bf16.msra.mxu1 %v2451_v43 }
 0x2d1   : > { %1703 = vmatprep.subr.bf16.mxu0 %v2456_v44  ;;  %1744 = vmatprep.subr.bf16.mxu1 %v2459_v45 }
 0x2d4   : > { %1704 = vmatpush2.bf16.msra.mxu0 %v2454_v46  ;;  %1745 = vmatpush2.bf16.msra.mxu1 %v2457_v47 }
 0x2d5   : > { %1705 = vmatprep.subr.bf16.mxu0 %v2462_v48  ;;  %1746 = vmatprep.subr.bf16.mxu1 %v2465_v49 }
 0x2d8   : > { %1706 = vmatpush2.bf16.msra.mxu0 %v2460_v50  ;;  %1747 = vmatpush2.bf16.msra.mxu1 %v2463_v51 }
 0x2d9   : > { %1707 = vmatprep.subr.bf16.mxu0 %v2468_v52  ;;  %1748 = vmatprep.subr.bf16.mxu1 %v2471_v53 }
 0x2dc   : > { %1708 = vmatpush2.bf16.msra.mxu0 %v2466_v54  ;;  %1749 = vmatpush2.bf16.msra.mxu1 %v2469_v55 }
 0x2dd   : > { %1709 = vmatprep.subr.bf16.mxu0 %v2474_v56  ;;  %1750 = vmatprep.subr.bf16.mxu1 %v2477_v57 }
 0x2e0   : > { %1710 = vmatpush2.bf16.msra.mxu0 %v2472_v58  ;;  %1751 = vmatpush2.bf16.msra.mxu1 %v2475_v59 }
 0x2e1   : > { %1711 = vmatprep.subr.bf16.mxu0 %v2480_v60  ;;  %1752 = vmatprep.subr.bf16.mxu1 %v2483_v63 }
 0x2e4   : > { %1712 = vmatpush2.bf16.msra.mxu0 %v2478_v0  ;;  %1753 = vmatpush2.bf16.msra.mxu1 %v2481_v1 }
 0x2e7   : > { %1714 = vmatmul.mubr.bf16.vlgmr.msra.gmra.mxu0 %v2883_v61  ;;  %1755 = vmatmul.mubr.bf16.vlgmr.msra.gmra.mxu1 %v2885_v62 }
 0x367   : > { %v1633_v9 = vpop.f32.mrf.mxu0  ;;  %v1674_v10 = vpop.f32.mrf.mxu1 }
 0x368   : > { %v1634_v11 = vadd.f32 %v1633_v9, %v942_v3 }
 0x369   : > { %v1635_v13 = vpop.f32.mrf.mxu0  ;;  %v1676_v14 = vpop.f32.mrf.mxu1 }
 0x36a   : > { %v1636_v15 = vadd.f32 %v1635_v13, %v946_v8  ;;  %v1675_v62 = vadd.f32 %v1674_v10, %v1634_v11 }
 0x36b   : > { %v1637_v61 = vpop.f32.mrf.mxu0  ;;  %v1678_v16 = vpop.f32.mrf.mxu1 }
 0x36c   : > { %v1677_v20 = vadd.f32 %v1676_v14, %v1636_v15 }
 0x36d   : > { %v1638_v21 = vpop.f32.mrf.mxu0  ;;  %v1679_v22 = vpop.f32.mrf.mxu1 }
 0x36e   : > { %v2112_v23 = vpack.c.bf16 %v1677_v20, %v1675_v62 }
 0x370   : > { %1779 = vst [vmem:[%s282_s15] sm:$0xff] %v2112_v23 }
 0x3a7   : > { %v1715_v24 = vpop.f32.mrf.mxu0  ;;  %v1756_v25 = vpop.f32.mrf.mxu1 }
 0x3a8   : > { %v1716_v27 = vadd.f32 %v1715_v24, %v950_v5 }
 0x3a9   : > { %v1717_v28 = vpop.f32.mrf.mxu0  ;;  %v1758_v29 = vpop.f32.mrf.mxu1 }
 0x3aa   : > { %v1718_v30 = vadd.f32 %v1717_v28, %v954_v7  ;;  %v1757_v17 = vadd.f32 %v1756_v25, %v1716_v27 }
 0x3ab   : > { %v1719_v31 = vpop.f32.mrf.mxu0  ;;  %v1760_v32 = vpop.f32.mrf.mxu1 }
 0x3ac   : > { %v1759_v33 = vadd.f32 %v1758_v29, %v1718_v30 }
 0x3ad   : > { %v1720_v18 = vpop.f32.mrf.mxu0  ;;  %v1761_v19 = vpop.f32.mrf.mxu1 }
 0x3ae   : > { %v2113_v6 = vpack.c.bf16 %v1759_v33, %v1757_v17 }
 0x3b0   : > { %1780 = vst [vmem:[%s282_s15 + $0x8] sm:$0xff] %v2113_v6 }
 0x3b1   : > { %2605 = shalt.err (!%p2602_p9)
}
 0x3b2   : > { %s2606_s30 = scalar_lea.hbm %s1794_s10, 256  ;;  %s2610_s24 = scalar_lea.hbm %s2943_s5, 512 }
 0x3b3   : > { %p2607_p13 = scmp.ne.s32.totalorder %s1794_s10, %s2606_s30  ;;  %p2611_p10 = scmp.lt.s32.totalorder %s1794_s10, %s2943_s5 }
 0x3b4   : > { %p2612_p11 = scmp.lt.s32.totalorder %s2610_s24, %s2606_s30 }
 0x3b5   : > { %p2608_p1 = pnand %p2607_p13, %p2961_p6 }
 0x3b6   : > { %p2613_p2 = por %p2612_p11, %p2611_p10 }
 0x3b7   : > { %p2609_p8 = pneg %p2608_p1 }
 0x3b9   : > { %p2614_p4 = pnand %p2613_p2, %p2609_p8 }
 0x3bb   : > { %2617 = shalt.err (!%p2614_p4)
}
 0x3bc   : > { %2129 = dma.vmem_to_hbm [thread:$0]  (%p2961_p6), %s1797_s17, 256, %s1794_s10, %s1782_s9  }
 0x3bd PF: > { %s1808_s15 = sand.u32 1, %s2652_s18   ;;  %p2962_p12 = scmp.ne.s32.totalorder %s2949_s25, 0 }
 0x3be   : > { %p2963_p0 = scmp.ge.s32.totalorder %s2664_s21, 2  ;;  %s1809_s16 = scalar_lea.sflag [#allocation4], %s1808_s15 }
 0x3c0   : > { %p2146_p5 = pnand %p2963_p0, %p2962_p12 }
 0x3c2   : > { %p2147_p3 = pneg %p2146_p5 }
 0x3c4   : > { %2647 = dma.done.wait (%p2147_p3), %s1809_s16, 256  }
 0x3c5   : > { %2649 = vsyncadd (%p2147_p3), %s1809_s16, 4294967040  ;;  %p20_p7 = scmp.ge.s32.totalorder %s2783_s28, 4   ;;  %s2964_s18 = smov %s2656_s19 }
 0x3c6   : > { %s2965_s19 = smov %s2660_s20  ;;  %s2966_s20 = smov %s2793_s6 }
 0x3c7   : > { %s2967_s21 = smov %s2783_s28  ;;  %22 = sbr.rel (!%p20_p7) target bundleno = 7 (0x7), region = 97 }
 0x3cc   :  { %1814 = vsyncpa [#allocation3], 1 }
 0x3cd   :  { %1816 = vsyncpa [#allocation3 + $0x1], 1 }
 0x3ce   :  { %1817 = vsyncpa [#allocation6], 1 }
 0x3cf   :  { %1818 = vsyncpa [#allocation9], 1 }
 0x3d0   :  { %1819 = vsyncpa [#allocation4], 1 }
 0x3d1   :  { %1821 = vsyncpa [#allocation4 + $0x1], 1 }

</bundles_post_ra>
